<compile_context>
chip_gen: v5e
topology: v5e:2x2
jax: 0.10.0
libtpu: 0.0.40
codegen_flags: <defaults>
</compile_context>

<pallas_src>
import jax
import jax.numpy as jnp
import numpy as np
from jax.experimental import pallas as pl
from jax.experimental.pallas import tpu as pltpu

B_PAD = 8      # padded batch (sublanes); forward asserts B <= B_PAD
F_PAD = 128    # padded feature width (lanes)

# Stash rows inside the fused weight slab (all in the zero region of the matmul operands).
WC_ROW = 120   # w[0]: conv1x1 weight wc in lanes :36
BC_ROW = 121   # w[0]: conv1x1 bias bc broadcast over all 128 lanes
CS_ROW = 122   # w[0]: colsum(W1[:, 36:]) in lanes :49
B1_ROW = 123   # w[0]: b1 in lanes :49
B2_ROW = 120   # w[1]: b2 in lanes :36


def _rl_kernel(si_ref, gp_ref, w_ref, out_ref, act_ref):
    # si_ref : (B, 36) raw search_info
    # gp_ref : (B, 36) raw grid_prob
    # w_ref  : (2, 128, 128) fused weights (see pack_params)
    # out_ref: (B, 36) logits
    # act_ref: (2, 8, 128) VMEM scratch for the padded activation layout
    B, F = si_ref.shape

    # Build the padded (8,128) activation layout in-kernel (zero-fill + masked stores).
    act_ref[...] = jnp.zeros_like(act_ref)
    act_ref[0, :B, :F] = si_ref[...]
    act_ref[1, :B, :F] = gp_ref[...]

    si = act_ref[0]                              # (8, 128)  search_info, zero-padded
    gp = act_ref[1]                              # (8, 128)  grid_prob, zero-padded

    wc_row = w_ref[0, WC_ROW:WC_ROW + 1, :]      # (1, 128)  conv weight (zeros past lane 35)
    bc_row = w_ref[0, BC_ROW:BC_ROW + 1, :]      # (1, 128)  conv bias, broadcast
    cs_row = w_ref[0, CS_ROW:CS_ROW + 1, :]      # (1, 128)  colsum(W1[:, 36:]) (zeros past 48)
    b1_row = w_ref[0, B1_ROW:B1_ROW + 1, :]      # (1, 128)  b1 (zeros past 48)
    b2_row = w_ref[1, B2_ROW:B2_ROW + 1, :]      # (1, 128)  b2 (zeros past 35)

    # 1x1 conv (36 -> 1) on a spatially-constant tile == per-batch scalar, broadcast to lanes.
    s = jnp.maximum(jnp.sum(si * wc_row, axis=-1, keepdims=True) + bc_row, 0.0)   # (8, 128)

    # h = relu( grid_prob @ W1[:, :36].T  +  s * colsum(W1[:, 36:])  +  b1 )
    h = jnp.dot(gp, w_ref[0], preferred_element_type=jnp.float32) + s * cs_row + b1_row
    h = jnp.maximum(h, 0.0)                      # lanes >= 49 are exactly 0

    # logits = h @ W2.T + b2 ; store only the valid (B, 36) region.
    logits = jnp.dot(h, w_ref[1], preferred_element_type=jnp.float32) + b2_row    # (8, 128)
    out_ref[...] = logits[:B, :36]


def pack_params(params):
    """One-time packing of the module parameters into a single TPU-friendly slab."""
    wc, bc, w1, b1, w2, b2 = (params[k] for k in ("wc", "bc", "w1", "b1", "w2", "b2"))

    # Linear(72, 49), grid_prob branch, with the conv/bias/colsum constants stashed in
    # rows that the (zero-padded) matmul LHS never touches.
    w1a = jnp.zeros((F_PAD, F_PAD), jnp.float32)
    w1a = w1a.at[:36, :49].set(w1[:, :36].T.astype(jnp.float32))
    w1a = w1a.at[WC_ROW, :36].set(wc.astype(jnp.float32))
    w1a = w1a.at[BC_ROW, :].set(jnp.float32(bc))
    w1a = w1a.at[CS_ROW, :49].set(jnp.sum(w1[:, 36:], axis=1).astype(jnp.float32))
    w1a = w1a.at[B1_ROW, :49].set(b1.astype(jnp.float32))

    # Linear(49, 36); b2 stashed in a row that h (zero past lane 48) never touches.
    w2p = jnp.zeros((F_PAD, F_PAD), jnp.float32)
    w2p = w2p.at[:49, :36].set(w2.T.astype(jnp.float32))
    w2p = w2p.at[B2_ROW, :36].set(b2.astype(jnp.float32))

    return jnp.stack([w1a, w2p])   # (2, 128, 128)


def forward_pallas(x, search_info, query_left, grid_prob, packed_weights):
    # x and query_left are unused (matches the PyTorch forward).
    del x, query_left
    B = search_info.shape[0]
    assert B <= B_PAD, f"batch {B} > {B_PAD}; pack multiple forwards per tile or add a grid"

    vmem = pl.BlockSpec(memory_space=pltpu.MemorySpace.VMEM)
    return pl.pallas_call(
        _rl_kernel,
        out_shape=jax.ShapeDtypeStruct((B, 36), jnp.float32),
        in_specs=[vmem, vmem, vmem],
        out_specs=vmem,
        scratch_shapes=[pltpu.VMEM((2, B_PAD, F_PAD), jnp.float32)],
        cost_estimate=pl.CostEstimate(
            flops=2 * 2 * B_PAD * F_PAD * F_PAD,                     # two 8x128x128 matmuls
            transcendentals=0,
            bytes_accessed=(2 * B * 36 + 2 * F_PAD * F_PAD + B * 36) * 4,
        ),
    )(search_info.astype(jnp.float32), grid_prob.astype(jnp.float32), packed_weights)


def forward_reference(x, search_info, query_left, grid_prob, params):
    del x, query_left
    wc, bc, w1, b1, w2, b2 = (params[k] for k in ("wc", "bc", "w1", "b1", "w2", "b2"))
    s = jax.nn.relu(search_info @ wc + bc)                                      # (B,)
    rl = jnp.concatenate([grid_prob, jnp.tile(s[:, None], (1, 36))], axis=1)    # (B, 72)
    h = jax.nn.relu(rl @ w1.T + b1)
    return h @ w2.T + b2


def init_params(key):
    ks = jax.random.split(key, 6)
    return {
        "wc": jax.random.normal(ks[0], (36,), jnp.float32) * 0.1,   # Conv2d(36,1,1,1) weight
        "bc": jnp.float32(0.05),                                    # Conv2d bias
        "w1": jax.random.normal(ks[1], (49, 72), jnp.float32) * 0.1,
        "b1": jax.random.normal(ks[2], (49,), jnp.float32) * 0.1,
        "w2": jax.random.normal(ks[3], (36, 49), jnp.float32) * 0.1,
        "b2": jax.random.normal(ks[4], (36,), jnp.float32) * 0.1,
    }


if __name__ == "__main__":
    key = jax.random.PRNGKey(0)
    k_x, k_si, k_ql, k_gp, k_p = jax.random.split(key, 5)

    B = 2
    x = jax.random.normal(k_x, (B, 4, 16, 16), jnp.float32)       # unused by forward
    search_info = jax.random.normal(k_si, (B, 36), jnp.float32)
    query_left = jax.random.normal(k_ql, (B,), jnp.float32)       # unused by forward
    grid_prob = jax.random.uniform(k_gp, (B, 36), jnp.float32)

    params = init_params(k_p)
    packed = jax.block_until_ready(pack_params(params))           # one-time packing

    fwd = jax.jit(forward_pallas)
    out = fwd(x, search_info, query_left, grid_prob, packed)
    out = jax.block_until_ready(out)

    ref = forward_reference(x, search_info, query_left, grid_prob, params)
    np.testing.assert_allclose(np.asarray(out), np.asarray(ref), rtol=1e-5, atol=1e-5)

    assert out.shape == (B, 36)
    print("KERNEL_OK")
</pallas_src>

<mosaic_0001>
module attributes {stable_mosaic.version = 11 : i64} {
  func.func @_rl_kernel(%arg0: memref<2x36xf32, #tpu.memory_space<vmem>>, %arg1: memref<2x36xf32, #tpu.memory_space<vmem>>, %arg2: memref<2x128x128xf32, #tpu.memory_space<vmem>>, %arg3: memref<2x36xf32, #tpu.memory_space<vmem>>, %arg4: memref<2x8x128xf32, #tpu.memory_space<vmem>>) attributes {dimension_semantics = [], scalar_prefetch = 0 : i64, scratch_operands = 1 : i64, tpu.core_type = #tpu.core_type<tc>} {
    %cst = arith.constant 0.000000e+00 : f32
    %0 = vector.broadcast %cst : f32 to vector<2x8x128xf32>
    %c0 = arith.constant 0 : index
    %c0_0 = arith.constant 0 : index
    %c0_1 = arith.constant 0 : index
    %1 = vector.load %arg4[%c0, %c0_0, %c0_1] : memref<2x8x128xf32, #tpu.memory_space<vmem>>, vector<2x8x128xf32>
    tpu.vector_store %arg4[%c0, %c0_0, %c0_1], %0 {strides = array<i32>} : memref<2x8x128xf32, #tpu.memory_space<vmem>>, vector<2x8x128xf32>,
    %c0_2 = arith.constant 0 : index
    %c0_3 = arith.constant 0 : index
    %2 = vector.load %arg0[%c0_2, %c0_3] : memref<2x36xf32, #tpu.memory_space<vmem>>, vector<2x36xf32>
    %c0_4 = arith.constant 0 : index
    %c0_5 = arith.constant 0 : index
    %c0_6 = arith.constant 0 : index
    %3 = vector.load %arg4[%c0_4, %c0_5, %c0_6] : memref<2x8x128xf32, #tpu.memory_space<vmem>>, vector<1x2x36xf32>
    %4 = vector.shape_cast %3 : vector<1x2x36xf32> to vector<2x36xf32>
    %5 = vector.shape_cast %2 : vector<2x36xf32> to vector<1x2x36xf32>
    tpu.vector_store %arg4[%c0_4, %c0_5, %c0_6], %5 {strides = array<i32>} : memref<2x8x128xf32, #tpu.memory_space<vmem>>, vector<1x2x36xf32>,
    %c0_7 = arith.constant 0 : index
    %c0_8 = arith.constant 0 : index
    %6 = vector.load %arg1[%c0_7, %c0_8] : memref<2x36xf32, #tpu.memory_space<vmem>>, vector<2x36xf32>
    %c1 = arith.constant 1 : index
    %c0_9 = arith.constant 0 : index
    %c0_10 = arith.constant 0 : index
    %7 = vector.load %arg4[%c1, %c0_9, %c0_10] : memref<2x8x128xf32, #tpu.memory_space<vmem>>, vector<1x2x36xf32>
    %8 = vector.shape_cast %7 : vector<1x2x36xf32> to vector<2x36xf32>
    %9 = vector.shape_cast %6 : vector<2x36xf32> to vector<1x2x36xf32>
    tpu.vector_store %arg4[%c1, %c0_9, %c0_10], %9 {strides = array<i32>} : memref<2x8x128xf32, #tpu.memory_space<vmem>>, vector<1x2x36xf32>,
    %c0_11 = arith.constant 0 : index
    %c0_12 = arith.constant 0 : index
    %c0_13 = arith.constant 0 : index
    %10 = vector.load %arg4[%c0_11, %c0_12, %c0_13] : memref<2x8x128xf32, #tpu.memory_space<vmem>>, vector<1x8x128xf32>
    %11 = vector.shape_cast %10 : vector<1x8x128xf32> to vector<8x128xf32>
    %c1_14 = arith.constant 1 : index
    %c0_15 = arith.constant 0 : index
    %c0_16 = arith.constant 0 : index
    %12 = vector.load %arg4[%c1_14, %c0_15, %c0_16] : memref<2x8x128xf32, #tpu.memory_space<vmem>>, vector<1x8x128xf32>
    %13 = vector.shape_cast %12 : vector<1x8x128xf32> to vector<8x128xf32>
    %c0_17 = arith.constant 0 : index
    %c120 = arith.constant 120 : index
    %c0_18 = arith.constant 0 : index
    %14 = vector.load %arg2[%c0_17, %c120, %c0_18] : memref<2x128x128xf32, #tpu.memory_space<vmem>>, vector<1x1x128xf32>
    %15 = vector.shape_cast %14 : vector<1x1x128xf32> to vector<1x128xf32>
    %c0_19 = arith.constant 0 : index
    %c121 = arith.constant 121 : index
    %c0_20 = arith.constant 0 : index
    %16 = vector.load %arg2[%c0_19, %c121, %c0_20] : memref<2x128x128xf32, #tpu.memory_space<vmem>>, vector<1x1x128xf32>
    %17 = vector.shape_cast %16 : vector<1x1x128xf32> to vector<1x128xf32>
    %c0_21 = arith.constant 0 : index
    %c122 = arith.constant 122 : index
    %c0_22 = arith.constant 0 : index
    %18 = vector.load %arg2[%c0_21, %c122, %c0_22] : memref<2x128x128xf32, #tpu.memory_space<vmem>>, vector<1x1x128xf32>
    %19 = vector.shape_cast %18 : vector<1x1x128xf32> to vector<1x128xf32>
    %c0_23 = arith.constant 0 : index
    %c123 = arith.constant 123 : index
    %c0_24 = arith.constant 0 : index
    %20 = vector.load %arg2[%c0_23, %c123, %c0_24] : memref<2x128x128xf32, #tpu.memory_space<vmem>>, vector<1x1x128xf32>
    %21 = vector.shape_cast %20 : vector<1x1x128xf32> to vector<1x128xf32>
    %c1_25 = arith.constant 1 : index
    %c120_26 = arith.constant 120 : index
    %c0_27 = arith.constant 0 : index
    %22 = vector.load %arg2[%c1_25, %c120_26, %c0_27] : memref<2x128x128xf32, #tpu.memory_space<vmem>>, vector<1x1x128xf32>
    %23 = vector.shape_cast %22 : vector<1x1x128xf32> to vector<1x128xf32>
    %24 = vector.broadcast %15 : vector<1x128xf32> to vector<8x128xf32>
    %25 = arith.mulf %11, %24 : vector<8x128xf32>
    %cst_28 = arith.constant dense<0.000000e+00> : vector<8xf32>
    %26 = vector.multi_reduction <add>, %25, %cst_28 [1] : vector<8x128xf32> to vector<8xf32>
    %27 = vector.shape_cast %26 : vector<8xf32> to vector<8x1xf32>
    %28 = vector.broadcast %27 : vector<8x1xf32> to vector<8x128xf32>
    %29 = vector.broadcast %17 : vector<1x128xf32> to vector<8x128xf32>
    %30 = arith.addf %28, %29 : vector<8x128xf32>
    %cst_29 = arith.constant 0.000000e+00 : f32
    %31 = vector.broadcast %cst_29 : f32 to vector<8x128xf32>
    %32 = arith.maximumf %30, %31 : vector<8x128xf32>
    %c0_30 = arith.constant 0 : index
    %c0_31 = arith.constant 0 : index
    %c0_32 = arith.constant 0 : index
    %33 = vector.load %arg2[%c0_30, %c0_31, %c0_32] : memref<2x128x128xf32, #tpu.memory_space<vmem>>, vector<1x128x128xf32>
    %34 = vector.shape_cast %33 : vector<1x128x128xf32> to vector<128x128xf32>
    %cst_33 = arith.constant dense<0.000000e+00> : vector<8x128xf32>
    %35 = tpu.matmul %13, %34, %cst_33 {dimension_numbers = #tpu.dot_dimension_numbers<[1], [0], [0], [1], [0, 0, 1, 1], [], []>} : vector<8x128xf32>, vector<128x128xf32>, vector<8x128xf32> -> vector<8x128xf32>
    %36 = vector.broadcast %19 : vector<1x128xf32> to vector<8x128xf32>
    %37 = arith.mulf %32, %36 : vector<8x128xf32>
    %38 = arith.addf %35, %37 : vector<8x128xf32>
    %39 = vector.broadcast %21 : vector<1x128xf32> to vector<8x128xf32>
    %40 = arith.addf %38, %39 : vector<8x128xf32>
    %cst_34 = arith.constant 0.000000e+00 : f32
    %41 = vector.broadcast %cst_34 : f32 to vector<8x128xf32>
    %42 = arith.maximumf %40, %41 : vector<8x128xf32>
    %c1_35 = arith.constant 1 : index
    %c0_36 = arith.constant 0 : index
    %c0_37 = arith.constant 0 : index
    %43 = vector.load %arg2[%c1_35, %c0_36, %c0_37] : memref<2x128x128xf32, #tpu.memory_space<vmem>>, vector<1x128x128xf32>
    %44 = vector.shape_cast %43 : vector<1x128x128xf32> to vector<128x128xf32>
    %cst_38 = arith.constant dense<0.000000e+00> : vector<8x128xf32>
    %45 = tpu.matmul %42, %44, %cst_38 {dimension_numbers = #tpu.dot_dimension_numbers<[1], [0], [0], [1], [0, 0, 1, 1], [], []>} : vector<8x128xf32>, vector<128x128xf32>, vector<8x128xf32> -> vector<8x128xf32>
    %46 = vector.broadcast %23 : vector<1x128xf32> to vector<8x128xf32>
    %47 = arith.addf %45, %46 : vector<8x128xf32>
    %48 = vector.extract_strided_slice %47 {offsets = [0, 0], sizes = [2, 36], strides = [1, 1]} : vector<8x128xf32> to vector<2x36xf32>
    %c0_39 = arith.constant 0 : index
    %c0_40 = arith.constant 0 : index
    %49 = vector.load %arg3[%c0_39, %c0_40] : memref<2x36xf32, #tpu.memory_space<vmem>>, vector<2x36xf32>
    tpu.vector_store %arg3[%c0_39, %c0_40], %48 {strides = array<i32>} : memref<2x36xf32, #tpu.memory_space<vmem>>, vector<2x36xf32>,
    return
  }
}

</mosaic_0001>

<bundles_post_ra>
// kernel: forward_pallas.1
= control target key start
LH: loop header
LB: loop body
LE: loop exit
PB: predicated region body
PF: predicated region fallthrough
CT: control target
= control target key end

     0   :  { %8 = vsyncpa [#allocation4], 0  ;;  %s334_s0 = inlined_call_operand.hbm [shape: f32[2,36], index: 0, kind: input, shape index: {}]   ;;  %s335_s1 = inlined_call_operand.hbm [shape: f32[2,36], index: 1, kind: input, shape index: {}]   ;;  %s336_s2 = inlined_call_operand.hbm [shape: f32[2,128,128], index: 2, kind: input, shape index: {}]   ;;  %s337_s3 = inlined_call_operand.hbm [shape: f32[2,36], index: 3, kind: output, shape index: {}]  }
   0x1   :  { %9 = vsyncpa [#allocation7], 0  ;;  %s27_s14 = sshll.u32 %s335_s1, 4  ;;  %s28_s14 = int_to_ptr.hbm [resolvable:$true] %s27_s14 }
   0x2   :  { %10 = vsyncpa [#allocation5], 0  ;;  %s292_s15 = smov [#allocation6]   ;;  %s16_s19 = sshll.u32 %s334_s0, 4  ;;  %s17_s19 = int_to_ptr.hbm [resolvable:$true] %s16_s19 }
   0x3   :  { %s29_s16 = sshll.u32 %s292_s15, 4  ;;  %s293_s20 = smov [#allocation3]   ;;  %s30_s16 = int_to_ptr.vmem [resolvable:$true] %s29_s16 }
   0x4   :  { %32 = dma.hbm_to_vmem [thread:$0]  %s28_s14, 32, %s30_s16, [#allocation7]  }
   0x5   :  { %s18_s21 = sshll.u32 %s293_s20, 4  ;;  %s37_s24 = sshll.u32 %s336_s2, 4  ;;  %s19_s21 = int_to_ptr.vmem [resolvable:$true] %s18_s21  ;;  %s38_s24 = int_to_ptr.hbm [resolvable:$true] %s37_s24 }
   0x6   :  { %21 = dma.hbm_to_vmem [thread:$0]  %s17_s19, 32, %s19_s21, [#allocation4]  }
   0x7   :  { %s294_s1 = smov [#allocation8]   ;;  %s295_s26 = smov 128  }
   0x8   :  { %s39_s25 = sshll.u32 %s294_s1, 4  ;;  %s296_s27 = smov 8   ;;  %s40_s25 = int_to_ptr.vmem [resolvable:$true] %s39_s25 }
   0x9   :  { %45 = dma.hbm_to_vmem [thread:$0]  %s38_s24, 4096, %s40_s25, [#allocation7], %s295_s26, %s295_s26, %s296_s27  }
   0xa   :  { %286 = dma.done.wait [#allocation4], 32  }
   0xb   :  { %287 = vsyncadd [#allocation4], 4294967264 }
   0xc   :  { %288 = dma.done.wait [#allocation7], 4128  }
   0xd   :  { %289 = vsyncadd [#allocation7], 4294963168  ;;  %v297_v0 = vmov 0.0   ;;  %v96_v1 = vld [vmem:[#allocation8 + $0x78] sm:$0xff]  ;;  %v95_v2 = vld [vmem:[#allocation8 + $0x70] sm:$0xff]  ;;  %vm61_vm0 = vcmask 287744  }
   0xe   :  { %59 = vst [vmem:[#allocation2 + $0x8] sm:$0xff] %v297_v0  ;;  %99 = vmatpush.msra.mxu0 %v96_v1  ;;  %v94_v3 = vld [vmem:[#allocation8 + $0x68] sm:$0xff]  ;;  %v93_v4 = vld [vmem:[#allocation8 + $0x60] sm:$0xff]  ;;  %v63_v5 = vld [vmem:[#allocation6] sm:$0x3]  ;;  %s298_s0 = smov [#allocation9]  }
   0xf   :  { %58 = vst [vmem:[#allocation2] sm:$0xff] %v297_v0  ;;  %v60_v6 = vld [vmem:[#allocation3] sm:$0x3]  ;;  %v136_v9 = vld [vmem:[#allocation8 + $0xf0] sm:$0xff]  ;;  %v90_v11 = vld [vmem:[#allocation8 + $0x48] sm:$0xff]  ;;  %s165_s2 = sshll.u32 %s298_s0, 4  ;;  %s166_s2 = int_to_ptr.vmem [resolvable:$true] %s165_s2 }
  0x10   :  { %100 = vmatpush.msra.mxu0 %v95_v2  ;;  %v92_v7 = vld [vmem:[#allocation8 + $0x58] sm:$0xff]  ;;  %65 = vst.msk [vmem:[#allocation2 + $0x8] sm:$0x3] %vm61_vm0, %v63_v5  ;;  %v91_v10 = vld [vmem:[#allocation8 + $0x50] sm:$0xff]  ;;  %v135_v12 = vld [vmem:[#allocation8 + $0xe8] sm:$0xff]  ;;  %s167_s30 = sshll.u32 %s337_s3, 4  ;;  %s168_s30 = int_to_ptr.hbm [resolvable:$true] %s167_s30 }
  0x11   :  { %62 = vst.msk [vmem:[#allocation2] sm:$0x3] %vm61_vm0, %v60_v6  ;;  %v137_v8 = vld [vmem:[#allocation8 + $0xf8] sm:$0xff]  ;;  %v134_v14 = vld [vmem:[#allocation8 + $0xe0] sm:$0xff]  ;;  %v132_v20 = vld [vmem:[#allocation8 + $0xd0] sm:$0xff] }
  0x12   :  { %101 = vmatpush.msra.mxu0 %v94_v3  ;;  %139 = vmatpush.msra.mxu1 %v137_v8  ;;  %v185_v13 = vld [vmem:[#allocation8 + $0x78] ss:$0 sm:$0xff]  ;;  %v89_v15 = vld [vmem:[#allocation8 + $0x40] sm:$0xff]  ;;  %v87_v21 = vld [vmem:[#allocation8 + $0x30] sm:$0xff] }
  0x13   :  { %v133_v16 = vld [vmem:[#allocation8 + $0xd8] sm:$0xff]  ;;  %v131_v22 = vld [vmem:[#allocation8 + $0xc8] sm:$0xff]  ;;  %v130_v24 = vld [vmem:[#allocation8 + $0xc0] sm:$0xff] }
  0x14   :  { %102 = vmatpush.msra.mxu0 %v93_v4  ;;  %140 = vmatpush.msra.mxu1 %v136_v9  ;;  %v88_v17 = vld [vmem:[#allocation8 + $0x38] sm:$0xff]  ;;  %v86_v23 = vld [vmem:[#allocation8 + $0x28] sm:$0xff]  ;;  %v85_v25 = vld [vmem:[#allocation8 + $0x20] sm:$0xff] }
  0x15   :  { %v129_v26 = vld [vmem:[#allocation8 + $0xb8] sm:$0xff]  ;;  %v83_v28 = vld [vmem:[#allocation8 + $0x10] sm:$0xff]  ;;  %v82_v29 = vld [vmem:[#allocation8 + $0x8] sm:$0xff] }
  0x16   :  { %103 = vmatpush.msra.mxu0 %v92_v7  ;;  %141 = vmatpush.msra.mxu1 %v135_v12  ;;  %v84_v27 = vld [vmem:[#allocation8 + $0x18] sm:$0xff]  ;;  %v81_v30 = vld [vmem:[#allocation8] sm:$0xff]  ;;  %v128_v32 = vld [vmem:[#allocation8 + $0xb0] sm:$0xff] }
  0x17   :  { %v67_v31 = vld [vmem:[#allocation2 + $0x8] sm:$0xff]  ;;  %v127_v33 = vld [vmem:[#allocation8 + $0xa8] sm:$0xff]  ;;  %v126_v34 = vld [vmem:[#allocation8 + $0xa0] sm:$0xff] }
  0x18   :  { %104 = vmatpush.msra.mxu0 %v91_v10  ;;  %v66_v18 = vld [vmem:[#allocation2] sm:$0xff]  ;;  %142 = vmatpush.msra.mxu1 %v134_v14  ;;  %v125_v35 = vld [vmem:[#allocation8 + $0x98] sm:$0xff]  ;;  %v122_v38 = vld [vmem:[#allocation8 + $0x80] sm:$0xff] }
  0x19   :  { %v75_v19 = vmul.f32 %v185_v13, %v66_v18  ;;  %v124_v36 = vld [vmem:[#allocation8 + $0x90] sm:$0xff]  ;;  %v123_v37 = vld [vmem:[#allocation8 + $0x88] sm:$0xff]  ;;  %v186_v39 = vld [vmem:[#allocation8 + $0x79] ss:$0 sm:$0xff] }
  0x1a   :  { %105 = vmatpush.msra.mxu0 %v90_v11  ;;  %143 = vmatpush.msra.mxu1 %v133_v16  ;;  %v187_v43 = vld [vmem:[#allocation8 + $0x7a] ss:$0 sm:$0xff]  ;;  %v188_v45 = vld [vmem:[#allocation8 + $0x7b] ss:$0 sm:$0xff]  ;;  %v189_v50 = vld [vmem:[#allocation8 + $0xf8] ss:$0 sm:$0xff] }
  0x1b   :  { %76 = vadd.xlane.f32.xlu0 %v75_v19 }
  0x1c   :  { %106 = vmatpush.msra.mxu0 %v89_v15  ;;  %144 = vmatpush.msra.mxu1 %v132_v20 }
  0x1e   :  { %107 = vmatpush.msra.mxu0 %v88_v17  ;;  %145 = vmatpush.msra.mxu1 %v131_v22 }
  0x20   :  { %108 = vmatpush.msra.mxu0 %v87_v21  ;;  %146 = vmatpush.msra.mxu1 %v130_v24 }
  0x22   :  { %109 = vmatpush.msra.mxu0 %v86_v23  ;;  %147 = vmatpush.msra.mxu1 %v129_v26 }
  0x24   :  { %110 = vmatpush.msra.mxu0 %v85_v25  ;;  %148 = vmatpush.msra.mxu1 %v128_v32 }
  0x26   :  { %111 = vmatpush.msra.mxu0 %v84_v27  ;;  %149 = vmatpush.msra.mxu1 %v127_v33 }
  0x28   :  { %112 = vmatpush.msra.mxu0 %v83_v28  ;;  %150 = vmatpush.msra.mxu1 %v126_v34 }
  0x2a   :  { %113 = vmatpush.msra.mxu0 %v82_v29  ;;  %151 = vmatpush.msra.mxu1 %v125_v35 }
  0x2c   :  { %114 = vmatpush.msra.mxu0 %v81_v30  ;;  %152 = vmatpush.msra.mxu1 %v124_v36 }
  0x2d   :  { %115 = vmatmul.f32.vlgmr.msra.gmra.mxu0 %v67_v31 }
  0x2e   :  { %153 = vmatpush.msra.mxu1 %v123_v37 }
  0x30   :  { %154 = vmatpush.msra.mxu1 %v122_v38 }
  0x8e   :  { %v77_v40 = vpop.xlane.xlu0 %76 }
  0x8f   :  { %v79_v41 = vadd.f32 %v186_v39, %v77_v40 }
  0x91   :  { %v80_v42 = vmax.f32 %v79_v41, 0.0 }
  0x93   :  { %v98_v44 = vmul.f32 %v187_v43, %v80_v42 }
  0xaa   :  { %v116_v46 = vpop.f32.mrf.mxu0 }
  0xab   :  { %v117_v47 = vadd.f32 %v116_v46, %v98_v44 }
  0xad   :  { %v120_v48 = vadd.f32 %v188_v45, %v117_v47 }
  0xaf   :  { %v121_v49 = vmax.f32 %v120_v48, 0.0 }
  0xb1   :  { %155 = vmatmul.f32.vlgmr.msra.gmra.mxu1 %v121_v49 }
 0x12e   :  { %v156_v51 = vpop.f32.mrf.mxu1 }
 0x12f   :  { %v157_v52 = vadd.f32 %v189_v50, %v156_v51 }
 0x131   :  { %159 = vst.msk [vmem:[#allocation9] sm:$0x3] %vm61_vm0, %v157_v52 }
 0x132   :  { %170 = dma.vmem_to_hbm [thread:$0]  %s166_s2, 32, %s168_s30, [#allocation5]  }
 0x133   :  { %290 = dma.done.wait [#allocation5], 32  }
 0x134   :  { %291 = vsyncadd [#allocation5], 4294967264 }
 0x135   :  { %175 = vsyncpa [#allocation4], 1 }
 0x136   :  { %176 = vsyncpa [#allocation7], 1 }
 0x137   :  { %177 = vsyncpa [#allocation5], 1 }

</bundles_post_ra>
